<compile_context>
chip_gen: v7x
topology: tpu7x:2x2x1
jax: 0.10.0
libtpu: 0.0.40
codegen_flags: <defaults>
</compile_context>

<pallas_src>
import functools

import jax
import jax.numpy as jnp
from jax import lax
from jax.experimental import pallas as pl
from jax.experimental.pallas import tpu as pltpu

_BIG = 1.0e30  # sentinel; margin - (+-2e30) stays finite in f32 and relu's to 0


def _mrl_kernel(scores_ref, labels_ref, out_ref, *, margin, num_samples, tb, ti):
    """One (batch-block, i-chunk) grid step.

    scores_ref, labels_ref : (TB, S_pad) blocks in VMEM (same block for all i).
    out_ref                : (1, 2) f32 in SMEM -> [partial hinge sum, pair count].
    """
    s_pad = scores_ref.shape[1]

    s_all = scores_ref[...].astype(jnp.float32)        # (TB, S_pad)
    lab_all = labels_ref[...].astype(jnp.float32)      # (TB, S_pad)

    lane = lax.broadcasted_iota(jnp.int32, (tb, s_pad), 1)
    valid = lane < num_samples                          # mask out lane padding
    is_pos = lab_all > 0.5
    neg_all = jnp.logical_and(jnp.logical_not(is_pos), valid)

    # j (negative) side: non-negatives / padding -> -BIG  =>  hinge == 0.
    s_j = jnp.where(neg_all, s_all, -_BIG)              # (TB, S_pad)

    # i (positive) side: current i-chunk of the sample axis.
    i_start = pl.multiple_of(pl.program_id(1) * ti, ti)
    s_i_chunk = scores_ref[:, pl.ds(i_start, ti)].astype(jnp.float32)   # (TB, TI)
    lab_i = labels_ref[:, pl.ds(i_start, ti)].astype(jnp.float32)
    lane_i = lax.broadcasted_iota(jnp.int32, (tb, ti), 1) + i_start
    pos_i = jnp.logical_and(lab_i > 0.5, lane_i < num_samples)
    # non-positives / padding -> +BIG  =>  hinge == 0.
    s_i = jnp.where(pos_i, s_i_chunk, _BIG)             # (TB, TI)

    # Pairwise hinge; sentinels make every invalid pair exactly 0 (no cube mask).
    hinge = jnp.maximum(margin - (s_i[:, :, None] - s_j[:, None, :]), 0.0)  # (TB,TI,Sp)

    # Reduce the cube on the MXU (ones-row matmul over the TB*TI axis), then a
    # tiny (1, S_pad) lane reduce.
    h2d = hinge.reshape(tb * ti, s_pad)
    ones_row = jnp.ones((1, tb * ti), dtype=jnp.float32)
    col = jnp.dot(ones_row, h2d, preferred_element_type=jnp.float32)    # (1, S_pad)
    total = jnp.sum(col)

    # Analytic pair count: per-row (#pos in this i-chunk) * (#valid negatives).
    n_pos_i = jnp.sum(pos_i.astype(jnp.float32), axis=1, keepdims=True)     # (TB, 1)
    n_neg = jnp.sum(neg_all.astype(jnp.float32), axis=1, keepdims=True)     # (TB, 1)
    count = jnp.sum(n_pos_i * n_neg)

    out_ref[0, 0] = total
    out_ref[0, 1] = count


def margin_ranking_loss(scores, labels, margin=1.0, reduction="mean"):
    """Pallas equivalent of yart.losses.MarginRankingLoss.forward.

    scores, labels: (batch_size, num_samples) arrays (any float dtype).
    Supports reduction in {'mean', 'sum'}.
    """
    assert scores.shape == labels.shape and scores.ndim == 2
    B, S = scores.shape

    # ---- tile sizing -------------------------------------------------------
    # Lane-dense sample axis (pad to a multiple of 128, min 128).
    s_pad = max(128, ((S + 127) // 128) * 128)
    # Batch block: full batch if small, else 8 rows (sublane-aligned).
    tb = B if B <= 8 else 8
    b_pad = ((B + tb - 1) // tb) * tb
    # i-chunk: largest multiple of 128 that divides s_pad while keeping the
    # per-block hinge cube <= ~2 MiB of f32 (fits all generations' scoped VMEM
    # defaults with room for double-buffered inputs and fusion temporaries).
    budget_elems = 512 * 1024
    n128 = s_pad // 128
    k_best = 1
    for k in range(1, n128 + 1):
        if n128 % k == 0 and tb * (128 * k) * s_pad <= budget_elems:
            k_best = k
    ti = 128 * k_best
    g_b = b_pad // tb
    g_i = s_pad // ti

    # Zero-padding: padded rows have label 0 -> no positives -> contribute 0;
    # padded columns are excluded inside the kernel via the lane-index mask.
    scores_p, labels_p = scores, labels
    if (b_pad, s_pad) != (B, S):
        scores_p = jnp.pad(scores, ((0, b_pad - B), (0, s_pad - S)))
        labels_p = jnp.pad(labels, ((0, b_pad - B), (0, s_pad - S)))

    kernel = functools.partial(
        _mrl_kernel, margin=float(margin), num_samples=S, tb=tb, ti=ti)

    itemsize = jnp.dtype(scores.dtype).itemsize
    cost = pl.CostEstimate(
        flops=4 * b_pad * s_pad * s_pad,
        transcendentals=0,
        bytes_accessed=2 * B * S * itemsize + g_b * g_i * 2 * 4)

    partials = pl.pallas_call(
        kernel,
        out_shape=jax.ShapeDtypeStruct((g_b * g_i, 2), jnp.float32),
        grid=(g_b, g_i),
        in_specs=[
            pl.BlockSpec((tb, s_pad), lambda b, i: (b, 0)),
            pl.BlockSpec((tb, s_pad), lambda b, i: (b, 0)),
        ],
        out_specs=pl.BlockSpec((1, 2), lambda b, i: (b * g_i + i, 0),
                               memory_space=pltpu.MemorySpace.SMEM),
        compiler_params=pltpu.CompilerParams(
            dimension_semantics=("parallel", "parallel"),
            vmem_limit_bytes=32 * 1024 * 1024),
        cost_estimate=cost,
    )(scores_p, labels_p)

    total = jnp.sum(partials[:, 0])
    # Per-block counts are exact small integers in f32; sum them in int32.
    count = jnp.sum(partials[:, 1].astype(jnp.int32)).astype(jnp.float32)

    # PyTorch returns 0.0 if there are no positives or no negatives at all.
    any_pos = jnp.any(labels > 0.5)
    any_neg = jnp.any(labels <= 0.5)
    both = jnp.logical_and(any_pos, any_neg)

    if reduction == "mean":
        return jnp.where(both, total / jnp.maximum(count, 1.0), 0.0)
    elif reduction == "sum":
        return jnp.where(both, total, 0.0)
    else:
        # TODO(synk): reduction='none' returns a data-dependent (B, P, N) tensor
        # (shape depends on label counts) and has no static-shape Pallas equivalent.
        raise NotImplementedError("reduction='none' is not supported")


def _reference(scores, labels, margin=1.0):
    """Pure-JAX reference mirroring the PyTorch masked formulation.

    Returns (masked hinge sum, valid-pair count)."""
    pos = labels > 0.5
    neg = ~pos
    diff = scores[:, :, None] - scores[:, None, :]
    hinge = jnp.maximum(margin - diff, 0.0)
    pair = pos[:, :, None] & neg[:, None, :]
    masked = jnp.where(pair, hinge, 0.0)
    return jnp.sum(masked), jnp.sum(pair).astype(jnp.float32)


if __name__ == "__main__":
    key = jax.random.PRNGKey(0)

    # Test 1: small shape (B=2, S=8) — exercises lane padding up to 128.
    B, S = 2, 8
    k1, k2 = jax.random.split(key)
    scores = jax.random.normal(k1, (B, S), dtype=jnp.float32)
    labels = jnp.broadcast_to((jnp.arange(S) < 2).astype(jnp.float32), (B, S))

    loss_mean = margin_ranking_loss(scores, labels, margin=1.0, reduction="mean")
    jax.block_until_ready(loss_mean)
    ref_sum, ref_cnt = _reference(scores, labels, margin=1.0)
    ref_mean = ref_sum / jnp.maximum(ref_cnt, 1.0)
    assert jnp.allclose(loss_mean, ref_mean, atol=1e-5, rtol=1e-5), (loss_mean, ref_mean)

    loss_sum = margin_ranking_loss(scores, labels, margin=1.0, reduction="sum")
    jax.block_until_ready(loss_sum)
    assert jnp.allclose(loss_sum, ref_sum, atol=1e-3, rtol=1e-5), (loss_sum, ref_sum)

    # Test 2: non-aligned shape (B=12, S=200) — exercises batch + lane padding
    # and the tiled grid. 3 positives per row (constant, as the torch .view needs).
    B2, S2 = 12, 200
    scores2 = jax.random.normal(k2, (B2, S2), dtype=jnp.float32)
    labels2 = jnp.broadcast_to((jnp.arange(S2) < 3).astype(jnp.float32), (B2, S2))

    loss2 = margin_ranking_loss(scores2, labels2, margin=1.0, reduction="mean")
    jax.block_until_ready(loss2)
    ref_sum2, ref_cnt2 = _reference(scores2, labels2, margin=1.0)
    ref_mean2 = ref_sum2 / jnp.maximum(ref_cnt2, 1.0)
    assert jnp.allclose(loss2, ref_mean2, atol=1e-5, rtol=1e-5), (loss2, ref_mean2)

    print("KERNEL_OK")
</pallas_src>

<mosaic_0001>
module attributes {stable_mosaic.version = 11 : i64} {
  func.func @_mrl_kernel(%arg0: i32, %arg1: i32, %arg2: memref<2x128xf32, #tpu.memory_space<vmem>>, %arg3: memref<2x128xf32, #tpu.memory_space<vmem>>, %arg4: memref<1x2xf32, #tpu.memory_space<smem>>) attributes {dimension_semantics = [#tpu.dimension_semantics<parallel>, #tpu.dimension_semantics<parallel>], iteration_bounds = array<i64: 1, 1>, scalar_prefetch = 0 : i64, scratch_operands = 0 : i64, tpu.core_type = #tpu.core_type<tc>, window_params = [{transform_indices = @transform_0, window_bounds = array<i64: 2, 128>}, {transform_indices = @transform_1, window_bounds = array<i64: 2, 128>}, {transform_indices = @transform_2, window_bounds = array<i64: 1, 2>}]} {
    %c0 = arith.constant 0 : index
    %c0_0 = arith.constant 0 : index
    %0 = vector.load %arg2[%c0, %c0_0] : memref<2x128xf32, #tpu.memory_space<vmem>>, vector<2x128xf32>
    %c0_1 = arith.constant 0 : index
    %c0_2 = arith.constant 0 : index
    %1 = vector.load %arg3[%c0_1, %c0_2] : memref<2x128xf32, #tpu.memory_space<vmem>>, vector<2x128xf32>
    %2 = tpu.iota {dimensions = array<i32: 1>} : vector<2x128xi32>
    %c8_i32 = arith.constant 8 : i32
    %3 = vector.broadcast %c8_i32 : i32 to vector<2x128xi32>
    %4 = arith.cmpi slt, %2, %3 : vector<2x128xi32>
    %cst = arith.constant 5.000000e-01 : f32
    %5 = vector.broadcast %cst : f32 to vector<2x128xf32>
    %6 = arith.cmpf ogt, %1, %5 : vector<2x128xf32>
    %cst_3 = arith.constant dense<true> : vector<2x128xi1>
    %7 = arith.xori %6, %cst_3 : vector<2x128xi1>
    %8 = arith.andi %7, %4 : vector<2x128xi1>
    %cst_4 = arith.constant -1.000000e+30 : f32
    %9 = vector.broadcast %cst_4 : f32 to vector<2x128xf32>
    %10 = arith.select %8, %0, %9 : vector<2x128xi1>, vector<2x128xf32>
    %c128_i32 = arith.constant 128 : i32
    %11 = arith.muli %arg1, %c128_i32 : i32
    %12 = tpu.assume_multiple %11, 128 : i32
    %c0_5 = arith.constant 0 : index
    %13 = arith.index_cast %12 : i32 to index
    %14 = vector.load %arg2[%c0_5, %13] : memref<2x128xf32, #tpu.memory_space<vmem>>, vector<2x128xf32>
    %c0_6 = arith.constant 0 : index
    %15 = arith.index_cast %12 : i32 to index
    %16 = vector.load %arg3[%c0_6, %15] : memref<2x128xf32, #tpu.memory_space<vmem>>, vector<2x128xf32>
    %17 = tpu.iota {dimensions = array<i32: 1>} : vector<2x128xi32>
    %18 = vector.broadcast %12 : i32 to vector<2x128xi32>
    %19 = arith.addi %17, %18 : vector<2x128xi32>
    %cst_7 = arith.constant 5.000000e-01 : f32
    %20 = vector.broadcast %cst_7 : f32 to vector<2x128xf32>
    %21 = arith.cmpf ogt, %16, %20 : vector<2x128xf32>
    %c8_i32_8 = arith.constant 8 : i32
    %22 = vector.broadcast %c8_i32_8 : i32 to vector<2x128xi32>
    %23 = arith.cmpi slt, %19, %22 : vector<2x128xi32>
    %24 = arith.andi %21, %23 : vector<2x128xi1>
    %cst_9 = arith.constant 1.000000e+30 : f32
    %25 = vector.broadcast %cst_9 : f32 to vector<2x128xf32>
    %26 = arith.select %24, %14, %25 : vector<2x128xi1>, vector<2x128xf32>
    %27 = vector.shape_cast %26 : vector<2x128xf32> to vector<2x128x1xf32>
    %28 = vector.shape_cast %10 : vector<2x128xf32> to vector<2x1x128xf32>
    %29 = vector.broadcast %27 : vector<2x128x1xf32> to vector<2x128x128xf32>
    %30 = vector.broadcast %28 : vector<2x1x128xf32> to vector<2x128x128xf32>
    %31 = arith.subf %29, %30 : vector<2x128x128xf32>
    %cst_10 = arith.constant 1.000000e+00 : f32
    %32 = vector.broadcast %cst_10 : f32 to vector<2x128x128xf32>
    %33 = arith.subf %32, %31 : vector<2x128x128xf32>
    %cst_11 = arith.constant 0.000000e+00 : f32
    %34 = vector.broadcast %cst_11 : f32 to vector<2x128x128xf32>
    %35 = arith.maximumf %33, %34 : vector<2x128x128xf32>
    %36 = vector.shape_cast %35 : vector<2x128x128xf32> to vector<256x128xf32>
    %cst_12 = arith.constant 1.000000e+00 : f32
    %37 = vector.broadcast %cst_12 : f32 to vector<1x256xf32>
    %cst_13 = arith.constant dense<0.000000e+00> : vector<1x128xf32>
    %38 = tpu.matmul %37, %36, %cst_13 {dimension_numbers = #tpu.dot_dimension_numbers<[1], [0], [0], [1], [0, 0, 1, 1], [], []>} : vector<1x256xf32>, vector<256x128xf32>, vector<1x128xf32> -> vector<1x128xf32>
    %39 = vector.shape_cast %38 : vector<1x128xf32> to vector<1x1x128xf32>
    %cst_14 = arith.constant dense<0.000000e+00> : vector<1xf32>
    %40 = vector.multi_reduction <add>, %39, %cst_14 [1, 2] : vector<1x1x128xf32> to vector<1xf32>
    %41 = vector.shape_cast %40 : vector<1xf32> to vector<1x1x1xf32>
    %42 = vector.extract %41[0, 0, 0] : f32 from vector<1x1x1xf32>
    %43 = arith.extui %24 : vector<2x128xi1> to vector<2x128xi32>
    %44 = arith.sitofp %43 : vector<2x128xi32> to vector<2x128xf32>
    %cst_15 = arith.constant dense<0.000000e+00> : vector<2xf32>
    %45 = vector.multi_reduction <add>, %44, %cst_15 [1] : vector<2x128xf32> to vector<2xf32>
    %46 = vector.shape_cast %45 : vector<2xf32> to vector<2x1xf32>
    %47 = arith.extui %8 : vector<2x128xi1> to vector<2x128xi32>
    %48 = arith.sitofp %47 : vector<2x128xi32> to vector<2x128xf32>
    %cst_16 = arith.constant dense<0.000000e+00> : vector<2xf32>
    %49 = vector.multi_reduction <add>, %48, %cst_16 [1] : vector<2x128xf32> to vector<2xf32>
    %50 = vector.shape_cast %49 : vector<2xf32> to vector<2x1xf32>
    %51 = arith.mulf %46, %50 : vector<2x1xf32>
    %52 = vector.shape_cast %51 : vector<2x1xf32> to vector<1x2x1xf32>
    %cst_17 = arith.constant dense<0.000000e+00> : vector<1xf32>
    %53 = vector.multi_reduction <add>, %52, %cst_17 [1, 2] : vector<1x2x1xf32> to vector<1xf32>
    %54 = vector.shape_cast %53 : vector<1xf32> to vector<1x1x1xf32>
    %55 = vector.extract %54[0, 0, 0] : f32 from vector<1x1x1xf32>
    %c0_18 = arith.constant 0 : index
    %c0_19 = arith.constant 0 : index
    %56 = memref.load %arg4[%c0_18, %c0_19] : memref<1x2xf32, #tpu.memory_space<smem>>
    memref.store %42, %arg4[%c0_18, %c0_19] : memref<1x2xf32, #tpu.memory_space<smem>>
    %c0_20 = arith.constant 0 : index
    %c1 = arith.constant 1 : index
    %57 = memref.load %arg4[%c0_20, %c1] : memref<1x2xf32, #tpu.memory_space<smem>>
    memref.store %55, %arg4[%c0_20, %c1] : memref<1x2xf32, #tpu.memory_space<smem>>
    return
  }
  func.func @transform_0(%arg0: i32, %arg1: i32) -> (i32, i32) {
    %c0_i32 = arith.constant 0 : i32
    %c0_i32_0 = arith.constant 0 : i32
    return %arg0, %c0_i32 : i32, i32
  }
  func.func @transform_1(%arg0: i32, %arg1: i32) -> (i32, i32) {
    %c0_i32 = arith.constant 0 : i32
    %c0_i32_0 = arith.constant 0 : i32
    return %arg0, %c0_i32 : i32, i32
  }
  func.func @transform_2(%arg0: i32, %arg1: i32) -> (i32, i32) {
    %c1_i32 = arith.constant 1 : i32
    %0 = arith.muli %arg0, %c1_i32 : i32
    %1 = arith.addi %0, %arg1 : i32
    %c0_i32 = arith.constant 0 : i32
    %c0_i32_0 = arith.constant 0 : i32
    return %1, %c0_i32 : i32, i32
  }
}

</mosaic_0001>

<bundles_post_ra>
// kernel: tpu_custom_call.1
= control target key start
LH: loop header
LB: loop body
LE: loop exit
PB: predicated region body
PF: predicated region fallthrough
CT: control target
= control target key end

     0   :  { %7 = vsyncpa [#allocation3], 0  ;;  %s657_s0 = inlined_call_operand.hbm [shape: f32[2,128], index: 0, kind: input, shape index: {}]   ;;  %s658_s1 = inlined_call_operand.vmem [shape: f32[2,128], index: 1, kind: input, shape index: {}]   ;;  %s659_s2 = inlined_call_operand.hbm [shape: f32[1,2], index: 2, kind: output, shape index: {}]  }
   0x1   :  { %8 = vsyncpa [#allocation4], 0  ;;  %s552_s9 = smov [#allocation2]   ;;  %s516_s13 = scalar_lea.hbm %s657_s0, 32 }
   0x2   :  { %s15_s10 = sshll.u32 %s552_s9, 4  ;;  %p517_p0 = scmp.ne.s32.totalorder %s657_s0, %s516_s13  ;;  %s16_s10 = int_to_ptr.vmem [resolvable:$true] %s15_s10 }
   0x3   :  { %p520_p1 = scmp.lt.u32.totalorder %s516_s13, %s657_s0 }
   0x5   :  { %p522_p2 = pnand %p520_p1, %p517_p0 }
   0x7   :  { %525 = shalt.err (!%p522_p2)
}
   0x8   :  { %s526_s18 = scalar_lea.vmem %s16_s10, 32  ;;  %p531_p4 = scmp.lt.s32.totalorder %s16_s10, %s16_s10 }
   0x9   :  { %p527_p3 = scmp.ne.s32.totalorder %s16_s10, %s526_s18  ;;  %p532_p5 = scmp.lt.s32.totalorder %s526_s18, %s526_s18 }
   0xb   :  { %p533_p6 = por %p532_p5, %p531_p4 }
   0xd   :  { %p534_p7 = pnand %p533_p6, %p527_p3 }
   0xf   :  { %537 = shalt.err (!%p534_p7)
}
  0x10   :  { %18 = dma.hbm_to_vmem [thread:$0]  %s657_s0, 32, %s16_s10, [#allocation3]  }
  0x11   :  { %548 = dma.done.wait [#allocation3], 32  }
  0x12   :  { %549 = vsyncadd [#allocation3], 4294967264  ;;  %v27_v0 = vlaneseq  ;;  %v553_v1 = vmov 1966171168   ;;  %v26_v6 = vld [vmem:[%s658_s1] sm:$0x3] }
  0x13   :  { %v183_v2 = vunpack.c.l.s4 %v553_v1  ;;  %v25_v7 = vld [vmem:[#allocation2] sm:$0x3]  ;;  %vm30_vm1 = vcmp.gt.f32.partialorder %v26_v6, 0.5  ;;  %vm554_vm2 = vmmov 1   ;;  %v555_v25 = vmov 1.0   ;;  %s538_s27 = scalar_lea.hbm %s659_s2, 16 }
  0x14   :  { %v28_v3 = vand.u32 127, %v27_v0  ;;  %v48_v5 = vshrl.u32 %v27_v0, 7  ;;  %v40_v8 = vld [vmem:[%s658_s1] sm:$0x3]  ;;  %vm31_vm3 = vmxor %vm30_vm1, %vm554_vm2  ;;  %374 = vmatprep.mubr.f32.mxu0 %v555_v25  ;;  %v556_v26 = vmov 0.0   ;;  %vm393_vm7 = vcmask 1041408   ;;  %p539_p8 = scmp.ne.s32.totalorder %s659_s2, %s538_s27  ;;  %p542_p9 = scmp.lt.u32.totalorder %s538_s27, %s659_s2 }
  0x15   :  { %v184_v4 = vunpack.c.0.s8 %v183_v2  ;;  %v38_v10 = vld [vmem:[#allocation2] sm:$0x3]  ;;  %vm43_vm4 = vcmp.gt.f32.partialorder %v40_v8, 0.5  ;;  %vm380_vm8 = vcmask 1040384   ;;  %vm403_vm9 = vcmask 1024  }
  0x16   :  { %vm29_vm0 = vcmp.lt.s32.totalorder %v28_v3, 8  ;;  %v49_v11 = vsub.s32 0, %v48_v5  ;;  %v116_v12 = vsub.s32 1, %v48_v5  ;;  %p544_p10 = pnand %p542_p9, %p539_p8 }
  0x17   :  { %v187_v9 = vsub.s32 %v184_v4, %v48_v5  ;;  %vm591_vm5 = vmand %vm31_vm3, %vm29_vm0 }
  0x18   :  { %v33_v14 = vsel %vm591_vm5, %v25_v7, -1e+30  ;;  %vm597_vm6 = vmand %vm43_vm4, %vm29_vm0  ;;  %v438_v29 = vsel %vm591_vm5, 1.0, %v556_v26 }
  0x19   :  { %v46_v16 = vsel %vm597_vm6, %v38_v10, 1e+30  ;;  %v188_v17 = vrot.slane %v33_v14, %v187_v9  ;;  %v437_v27 = vsel %vm597_vm6, 1.0, %v556_v26  ;;  %v399_v30 = vsel %vm393_vm7, %v438_v29, 0.0 }
  0x1a   :  { %v50_v18 = vrot.slane %v46_v16, %v49_v11  ;;  %v117_v19 = vrot.slane %v46_v16, %v116_v12  ;;  %v394_v28 = vsel %vm393_vm7, %v437_v27, 0.0 }
  0x1b   :  { %v189_v20 = vcombine.high %v188_v17, %v188_v17  ;;  %v196_v21 = vrot.slane %v188_v17, %v187_v9 }
  0x1c   :  { %119 = vbcast.lane.b32.xlu0 %v117_v19, 256  ;;  %52 = vbcast.lane.b32.xlu1 %v50_v18, 256 }
  0x1d   :  { %v203_v22 = vrot.slane %v189_v20, %v187_v9  ;;  %v603_v23 = vrot.slane %v196_v21, %v49_v11 }
  0x1f   :  { %v605_v24 = vrot.slane %v203_v22, %v49_v11 }
  0x20   :  { %123 = vbcast.lane.b32.xlu0 %v117_v19, 264  ;;  %56 = vbcast.lane.b32.xlu1 %v50_v18, 264 }
  0x24   :  { %127 = vbcast.lane.b32.xlu0 %v117_v19, 272  ;;  %131 = vbcast.lane.b32.xlu1 %v117_v19, 280 }
  0x28   :  { %60 = vbcast.lane.b32.xlu0 %v50_v18, 272  ;;  %64 = vbcast.lane.b32.xlu1 %v50_v18, 280 }
  0x2c   :  { %135 = vbcast.lane.b32.xlu0 %v117_v19, 288  ;;  %139 = vbcast.lane.b32.xlu1 %v117_v19, 296 }
  0x30   :  { %68 = vbcast.lane.b32.xlu0 %v50_v18, 288  ;;  %72 = vbcast.lane.b32.xlu1 %v50_v18, 296 }
  0x34   :  { %143 = vbcast.lane.b32.xlu0 %v117_v19, 304  ;;  %147 = vbcast.lane.b32.xlu1 %v117_v19, 312 }
  0x38   :  { %76 = vbcast.lane.b32.xlu0 %v50_v18, 304  ;;  %80 = vbcast.lane.b32.xlu1 %v50_v18, 312 }
  0x3c   :  { %151 = vbcast.lane.b32.xlu0 %v117_v19, 320  ;;  %155 = vbcast.lane.b32.xlu1 %v117_v19, 328 }
  0x40   :  { %84 = vbcast.lane.b32.xlu0 %v50_v18, 320  ;;  %88 = vbcast.lane.b32.xlu1 %v50_v18, 328 }
  0x44   :  { %159 = vbcast.lane.b32.xlu0 %v117_v19, 336  ;;  %163 = vbcast.lane.b32.xlu1 %v117_v19, 344 }
  0x48   :  { %92 = vbcast.lane.b32.xlu0 %v50_v18, 336  ;;  %96 = vbcast.lane.b32.xlu1 %v50_v18, 344 }
  0x4c   :  { %167 = vbcast.lane.b32.xlu0 %v117_v19, 352  ;;  %171 = vbcast.lane.b32.xlu1 %v117_v19, 360 }
  0x50   :  { %100 = vbcast.lane.b32.xlu0 %v50_v18, 352  ;;  %104 = vbcast.lane.b32.xlu1 %v50_v18, 360 }
  0x54   :  { %175 = vbcast.lane.b32.xlu0 %v117_v19, 368  ;;  %179 = vbcast.lane.b32.xlu1 %v117_v19, 376 }
  0x58   :  { %108 = vbcast.lane.b32.xlu0 %v50_v18, 368  ;;  %112 = vbcast.lane.b32.xlu1 %v50_v18, 376 }
  0x77   :  { %395 = vadd.xlane.f32.xlu0 %v394_v28 }
  0x7c   :  { %400 = vadd.xlane.f32.xlu1 %v399_v30 }
  0x8e   :  { %v120_v31 = vpop.permute.xlu0 %119  ;;  %v53_v32 = vpop.permute.xlu1 %52 }
  0x8f   :  { %v230_v33 = vsub.f32 %v120_v31, %v605_v24  ;;  %v214_v34 = vsub.f32 %v53_v32, %v603_v23 }
  0x91   :  { %v262_v35 = vsub.f32 1.0, %v230_v33  ;;  %v246_v36 = vsub.f32 1.0, %v214_v34 }
  0x92   :  { %v124_v37 = vpop.permute.xlu0 %123  ;;  %v57_v38 = vpop.permute.xlu1 %56 }
  0x93   :  { %v231_v39 = vsub.f32 %v124_v37, %v605_v24  ;;  %v215_v40 = vsub.f32 %v57_v38, %v603_v23  ;;  %v294_v43 = vmax.f32 %v262_v35, 0.0  ;;  %v278_v44 = vmax.f32 %v246_v36, 0.0 }
  0x95   :  { %v263_v41 = vsub.f32 1.0, %v231_v39  ;;  %v247_v42 = vsub.f32 1.0, %v215_v40 }
  0x96   :  { %v128_v45 = vpop.permute.xlu0 %127  ;;  %v132_v46 = vpop.permute.xlu1 %131 }
  0x97   :  { %v295_v47 = vmax.f32 %v263_v41, 0.0  ;;  %v279_v48 = vmax.f32 %v247_v42, 0.0  ;;  %v232_v49 = vsub.f32 %v128_v45, %v605_v24  ;;  %v233_v50 = vsub.f32 %v132_v46, %v605_v24 }
  0x99   :  { %v264_v51 = vsub.f32 1.0, %v232_v49  ;;  %v265_v52 = vsub.f32 1.0, %v233_v50  ;;  %v474_v53 = vpack.c.bf16 %v295_v47, %v294_v43  ;;  %v476_v54 = vpack.c.bf16 %v279_v48, %v278_v44 }
  0x9a   :  { %v61_v55 = vpop.permute.xlu0 %60  ;;  %v65_v56 = vpop.permute.xlu1 %64 }
  0x9b   :  { %v296_v57 = vmax.f32 %v264_v51, 0.0  ;;  %v297_v58 = vmax.f32 %v265_v52, 0.0  ;;  %v216_v59 = vsub.f32 %v61_v55, %v603_v23  ;;  %v217_v60 = vsub.f32 %v65_v56, %v603_v23  ;;  %475 = vmatprep.subr.bf16.mxu0 %v474_v53 }
  0x9c   :  { %477 = vmatpush3.bf16.msra.mxu0 %v476_v54 }
  0x9d   :  { %v478_v61 = vpack.c.bf16 %v297_v58, %v296_v57  ;;  %v248_v62 = vsub.f32 1.0, %v216_v59  ;;  %v249_v63 = vsub.f32 1.0, %v217_v60 }
  0x9e   :  { %v136_v0 = vpop.permute.xlu0 %135  ;;  %v140_v1 = vpop.permute.xlu1 %139 }
  0x9f   :  { %v280_v2 = vmax.f32 %v248_v62, 0.0  ;;  %v281_v3 = vmax.f32 %v249_v63, 0.0  ;;  %v234_v4 = vsub.f32 %v136_v0, %v605_v24  ;;  %v235_v5 = vsub.f32 %v140_v1, %v605_v24  ;;  %479 = vmatprep.subr.bf16.mxu0 %v478_v61 }
  0xa1   :  { %v480_v6 = vpack.c.bf16 %v281_v3, %v280_v2  ;;  %v266_v7 = vsub.f32 1.0, %v234_v4  ;;  %v267_v8 = vsub.f32 1.0, %v235_v5 }
  0xa2   :  { %v69_v9 = vpop.permute.xlu0 %68  ;;  %v73_v10 = vpop.permute.xlu1 %72 }
  0xa3   :  { %v298_v11 = vmax.f32 %v266_v7, 0.0  ;;  %v299_v12 = vmax.f32 %v267_v8, 0.0  ;;  %v218_v13 = vsub.f32 %v69_v9, %v603_v23  ;;  %v219_v14 = vsub.f32 %v73_v10, %v603_v23  ;;  %481 = vmatpush3.bf16.msra.mxu0 %v480_v6 }
  0xa5   :  { %v482_v15 = vpack.c.bf16 %v299_v12, %v298_v11  ;;  %v250_v16 = vsub.f32 1.0, %v218_v13  ;;  %v251_v17 = vsub.f32 1.0, %v219_v14 }
  0xa6   :  { %v144_v18 = vpop.permute.xlu0 %143  ;;  %v148_v19 = vpop.permute.xlu1 %147 }
  0xa7   :  { %v282_v20 = vmax.f32 %v250_v16, 0.0  ;;  %v283_v21 = vmax.f32 %v251_v17, 0.0  ;;  %v236_v22 = vsub.f32 %v144_v18, %v605_v24  ;;  %v237_v26 = vsub.f32 %v148_v19, %v605_v24  ;;  %483 = vmatprep.subr.bf16.mxu0 %v482_v15 }
  0xa9   :  { %v484_v27 = vpack.c.bf16 %v283_v21, %v282_v20  ;;  %v268_v28 = vsub.f32 1.0, %v236_v22  ;;  %v269_v29 = vsub.f32 1.0, %v237_v26 }
  0xaa   :  { %v77_v30 = vpop.permute.xlu0 %76  ;;  %v81_v31 = vpop.permute.xlu1 %80 }
  0xab   :  { %v300_v32 = vmax.f32 %v268_v28, 0.0  ;;  %v301_v33 = vmax.f32 %v269_v29, 0.0  ;;  %v220_v34 = vsub.f32 %v77_v30, %v603_v23  ;;  %v221_v35 = vsub.f32 %v81_v31, %v603_v23  ;;  %485 = vmatpush3.bf16.msra.mxu0 %v484_v27 }
  0xad   :  { %v486_v36 = vpack.c.bf16 %v301_v33, %v300_v32  ;;  %v252_v37 = vsub.f32 1.0, %v220_v34  ;;  %v253_v38 = vsub.f32 1.0, %v221_v35 }
  0xae   :  { %v152_v39 = vpop.permute.xlu0 %151  ;;  %v156_v40 = vpop.permute.xlu1 %155 }
  0xaf   :  { %v284_v41 = vmax.f32 %v252_v37, 0.0  ;;  %v285_v42 = vmax.f32 %v253_v38, 0.0  ;;  %v238_v43 = vsub.f32 %v152_v39, %v605_v24  ;;  %v239_v44 = vsub.f32 %v156_v40, %v605_v24  ;;  %487 = vmatprep.subr.bf16.mxu0 %v486_v36 }
  0xb1   :  { %v488_v45 = vpack.c.bf16 %v285_v42, %v284_v41  ;;  %v270_v46 = vsub.f32 1.0, %v238_v43  ;;  %v271_v47 = vsub.f32 1.0, %v239_v44 }
  0xb2   :  { %v85_v48 = vpop.permute.xlu0 %84  ;;  %v89_v49 = vpop.permute.xlu1 %88 }
  0xb3   :  { %v302_v50 = vmax.f32 %v270_v46, 0.0  ;;  %v303_v51 = vmax.f32 %v271_v47, 0.0  ;;  %v222_v52 = vsub.f32 %v85_v48, %v603_v23  ;;  %v223_v53 = vsub.f32 %v89_v49, %v603_v23  ;;  %489 = vmatpush3.bf16.msra.mxu0 %v488_v45 }
  0xb5   :  { %v490_v54 = vpack.c.bf16 %v303_v51, %v302_v50  ;;  %v254_v55 = vsub.f32 1.0, %v222_v52  ;;  %v255_v56 = vsub.f32 1.0, %v223_v53 }
  0xb6   :  { %v160_v57 = vpop.permute.xlu0 %159  ;;  %v164_v58 = vpop.permute.xlu1 %163 }
  0xb7   :  { %v286_v59 = vmax.f32 %v254_v55, 0.0  ;;  %v287_v60 = vmax.f32 %v255_v56, 0.0  ;;  %v240_v61 = vsub.f32 %v160_v57, %v605_v24  ;;  %v241_v62 = vsub.f32 %v164_v58, %v605_v24  ;;  %491 = vmatprep.subr.bf16.mxu0 %v490_v54 }
  0xb9   :  { %v492_v63 = vpack.c.bf16 %v287_v60, %v286_v59  ;;  %v272_v0 = vsub.f32 1.0, %v240_v61  ;;  %v273_v1 = vsub.f32 1.0, %v241_v62 }
  0xba   :  { %v93_v2 = vpop.permute.xlu0 %92  ;;  %v97_v3 = vpop.permute.xlu1 %96 }
  0xbb   :  { %v304_v4 = vmax.f32 %v272_v0, 0.0  ;;  %v305_v5 = vmax.f32 %v273_v1, 0.0  ;;  %v224_v6 = vsub.f32 %v93_v2, %v603_v23  ;;  %v225_v7 = vsub.f32 %v97_v3, %v603_v23  ;;  %493 = vmatpush3.bf16.msra.mxu0 %v492_v63 }
  0xbd   :  { %v494_v8 = vpack.c.bf16 %v305_v5, %v304_v4  ;;  %v256_v9 = vsub.f32 1.0, %v224_v6  ;;  %v257_v10 = vsub.f32 1.0, %v225_v7 }
  0xbe   :  { %v168_v11 = vpop.permute.xlu0 %167  ;;  %v172_v12 = vpop.permute.xlu1 %171 }
  0xbf   :  { %v288_v13 = vmax.f32 %v256_v9, 0.0  ;;  %v289_v14 = vmax.f32 %v257_v10, 0.0  ;;  %v242_v15 = vsub.f32 %v168_v11, %v605_v24  ;;  %v243_v16 = vsub.f32 %v172_v12, %v605_v24  ;;  %495 = vmatprep.subr.bf16.mxu0 %v494_v8 }
  0xc1   :  { %v496_v17 = vpack.c.bf16 %v289_v14, %v288_v13  ;;  %v274_v18 = vsub.f32 1.0, %v242_v15  ;;  %v275_v19 = vsub.f32 1.0, %v243_v16 }
  0xc2   :  { %v101_v20 = vpop.permute.xlu0 %100  ;;  %v105_v21 = vpop.permute.xlu1 %104 }
  0xc3   :  { %v306_v22 = vmax.f32 %v274_v18, 0.0  ;;  %v307_v26 = vmax.f32 %v275_v19, 0.0  ;;  %v226_v27 = vsub.f32 %v101_v20, %v603_v23  ;;  %v227_v28 = vsub.f32 %v105_v21, %v603_v23  ;;  %497 = vmatpush3.bf16.msra.mxu0 %v496_v17 }
  0xc5   :  { %v498_v29 = vpack.c.bf16 %v307_v26, %v306_v22  ;;  %v258_v30 = vsub.f32 1.0, %v226_v27  ;;  %v259_v31 = vsub.f32 1.0, %v227_v28 }
  0xc6   :  { %v176_v32 = vpop.permute.xlu0 %175  ;;  %v180_v33 = vpop.permute.xlu1 %179 }
  0xc7   :  { %v290_v34 = vmax.f32 %v258_v30, 0.0  ;;  %v291_v35 = vmax.f32 %v259_v31, 0.0  ;;  %v244_v36 = vsub.f32 %v176_v32, %v605_v24  ;;  %v245_v37 = vsub.f32 %v180_v33, %v605_v24  ;;  %499 = vmatprep.subr.bf16.mxu0 %v498_v29 }
  0xc9   :  { %v500_v38 = vpack.c.bf16 %v291_v35, %v290_v34  ;;  %v276_v39 = vsub.f32 1.0, %v244_v36  ;;  %v277_v40 = vsub.f32 1.0, %v245_v37 }
  0xca   :  { %v109_v41 = vpop.permute.xlu0 %108  ;;  %v113_v42 = vpop.permute.xlu1 %112 }
  0xcb   :  { %v308_v43 = vmax.f32 %v276_v39, 0.0  ;;  %v309_v44 = vmax.f32 %v277_v40, 0.0  ;;  %v228_v45 = vsub.f32 %v109_v41, %v603_v23  ;;  %v229_v46 = vsub.f32 %v113_v42, %v603_v23  ;;  %501 = vmatpush3.bf16.msra.mxu0 %v500_v38 }
  0xcd   :  { %v502_v47 = vpack.c.bf16 %v309_v44, %v308_v43  ;;  %v260_v48 = vsub.f32 1.0, %v228_v45  ;;  %v261_v49 = vsub.f32 1.0, %v229_v46 }
  0xcf   :  { %v292_v50 = vmax.f32 %v260_v48, 0.0  ;;  %v293_v51 = vmax.f32 %v261_v49, 0.0  ;;  %503 = vmatprep.subr.bf16.mxu0 %v502_v47 }
  0xd1   :  { %v504_v24 = vpack.c.bf16 %v293_v51, %v292_v50 }
  0xd3   :  { %505 = vmatpush3.bf16.msra.mxu0 %v504_v24 }
  0xd6   :  { %375 = vmatmul.mubr.f32.vlgmr.msra.gmra.mrb[0].mxu0 %v555_v25 }
 0x104   :  { %v396_v52 = vpop.xlane.xlu0 %395 }
 0x109   :  { %v401_v53 = vpop.xlane.xlu1 %400 }
 0x10a   :  { %v402_v57 = vmul.f32 %v401_v53, %v396_v52 }
 0x10c   :  { %v404_v58 = vsel %vm403_vm9, %v402_v57, 0.0 }
 0x1a9   :  { %v471_v54 = vpop.f32.mrb[0].mxu0 }
 0x1aa   :  { %v472_v55 = vpop.f32.mrb[1].mxu0 }
 0x1ab   :  { %v473_v56 = vadd.f32 %v472_v55, %v471_v54 }
 0x1ad   :  { %v381_v23 = vsel %vm380_vm8, %v473_v56, 0.0 }
 0x1ae   :  { %382 = vadd.xlane.f32.xlu0 %v381_v23 }
 0x1b2   :  { %405 = vadd.xlane.f32.xlu0 %v404_v58 }
 0x23b   :  { %v383_v59 = vpop.xlane.xlu0 %382 }
 0x23c   :  { %v384_v60 = vrot.slane %v383_v59, 4 }
 0x23e   :  { %v385_v61 = vadd.f32 %v384_v60, %v383_v59 }
 0x23f   :  { %v406_v62 = vpop.xlane.xlu0 %405 }
 0x240   :  { %v386_v63 = vrot.slane %v385_v61, 2  ;;  %v407_v0 = vrot.slane %v406_v62, 4 }
 0x242   :  { %v408_v1 = vadd.f32 %v407_v0, %v406_v62  ;;  %v387_v25 = vadd.f32 %v386_v63, %v385_v61 }
 0x244   :  { %v409_v2 = vrot.slane %v408_v1, 2  ;;  %v388_v3 = vrot.slane %v387_v25, 1 }
 0x246   :  { %v410_v4 = vadd.f32 %v409_v2, %v408_v1  ;;  %v389_v5 = vadd.f32 %v388_v3, %v387_v25 }
 0x248   :  { %506 = vpush %v389_v5  ;;  %v411_v6 = vrot.slane %v410_v4, 1 }
 0x24a   :  { %v412_v7 = vadd.f32 %v411_v6, %v410_v4 }
 0x24c   :  { %508 = vpush %v412_v7 }
 0x279   :  { %s507_s0 = spop %506 }
 0x27a   :  { %415 = sst [smem:[#allocation5]] %s507_s0 }
 0x27d   :  { %s509_s1 = spop %508 }
 0x27e   :  { %417 = sst [smem:[#allocation5 + $0x1]] %s509_s1 }
 0x27f   :  { %547 = shalt.err (!%p544_p10)
}
 0x280   :  { %s557_s4 = smov [#allocation5]  }
 0x281   :  { %428 = dma.smem_to_hbm %s557_s4, 16, %s659_s2, [#allocation4]  }
 0x282   :  { %550 = dma.done.wait [#allocation4], 16  }
 0x283   :  { %551 = vsyncadd [#allocation4], 4294967280 }
 0x284   :  { %432 = sfence }
 0x285   :  { %433 = vsyncpa [#allocation3], 1 }
 0x286   :  { %434 = vsyncpa [#allocation4], 1 }

</bundles_post_ra>
